<compile_context>
chip_gen: v7x
topology: tpu7x:2x2x1
jax: 0.10.0
libtpu: 0.0.40
codegen_flags: <defaults>
</compile_context>

<pallas_src>
import math
import jax
import jax.numpy as jnp
from jax.experimental import pallas as pl
from jax.experimental.pallas import tpu as pltpu

LANES = 128
LAYER_NAMES = ("enc_gc1", "enc_gc2", "dec_gc1", "dec_gc2")


def _round_up(x, m):
    return ((x + m - 1) // m) * m


def _pad2(a, rows, cols):
    r, c = a.shape
    return jnp.pad(a, ((0, rows - r), (0, cols - c)))


def _make_teacher_kernel(adj_first_flags, use_bf16):
    """Build the fused 4-layer GCN kernel.

    adj_first_flags: static per-layer bool. True  -> (adj @ h) @ W
                                            False -> adj @ (h @ W)
    use_bf16: cast matmul operands to bf16 (MXU-native on v6e/v7x); f32
              accumulation and an f32 bias+ReLU epilogue in all cases.
    """
    mm_dtype = jnp.bfloat16 if use_bf16 else jnp.float32

    def kernel(x_ref, adj_ref,
               w1_ref, b1_ref, w2_ref, b2_ref,
               w3_ref, b3_ref, w4_ref, b4_ref,
               emb_ref, out_ref):
        # adj loaded (and cast) once, reused by all four layers.
        adj = adj_ref[...].astype(mm_dtype)

        def layer(h, w_ref, b_ref, adj_first):
            h = h.astype(mm_dtype)
            w = w_ref[...].astype(mm_dtype)
            if adj_first:
                ah = jnp.dot(adj, h, preferred_element_type=jnp.float32)
                out = jnp.dot(ah.astype(mm_dtype), w,
                              preferred_element_type=jnp.float32)
            else:
                hw = jnp.dot(h, w, preferred_element_type=jnp.float32)
                out = jnp.dot(adj, hw.astype(mm_dtype),
                              preferred_element_type=jnp.float32)
            # bias + ReLU on the VPU in f32 (full 128-lane vregs).
            return jnp.maximum(out + b_ref[...], 0.0)

        # TODO(synk): dropout is identity (inference mode); training-mode
        # dropout would need pltpu.prng_seed / prng_random_bits masks here.
        h = layer(x_ref[...], w1_ref, b1_ref, adj_first_flags[0])    # enc gc1
        emb = layer(h, w2_ref, b2_ref, adj_first_flags[1])           # enc gc2
        emb_ref[...] = emb.astype(emb_ref.dtype)
        d = layer(emb, w3_ref, b3_ref, adj_first_flags[2])           # dec gc1
        out_ref[...] = layer(d, w4_ref, b4_ref,
                             adj_first_flags[3]).astype(out_ref.dtype)

    return kernel


def pack_teacher_params(params):
    """Pad W/b to lane-dense per-layer widths ONCE; reuse across forward calls.

    Zero-padding is exact: padded lanes stay zero through matmul+bias+ReLU and
    the wrapper slices them off.
    """
    packed, dims = [], []
    for name in LAYER_NAMES:
        w, b = params[name]
        fin, fout = w.shape
        pin, pout = _round_up(fin, LANES), _round_up(fout, LANES)
        packed.append(_pad2(w.astype(jnp.float32), pin, pout))
        packed.append(_pad2(b.astype(jnp.float32).reshape(1, -1), 1, pout))
        dims.append((fin, fout))
    return tuple(jax.device_put(p) for p in packed), tuple(dims)


def make_teacher_forward(N, dims, use_bf16=False):
    """Build a jitted fused forward for fixed shapes. dims = ((fin,fout),)*4."""
    Np = _round_up(N, LANES)                 # lane-dense adj (last dim of adj)
    pin0 = _round_up(dims[0][0], LANES)
    pouts = [_round_up(fout, LANES) for _, fout in dims]
    pins = [pin0] + pouts[:-1]
    nhid2, nhid4 = dims[1][1], dims[3][1]

    # Contract over the smaller *true* feature dim first:
    #   expanding layer (fout > fin) -> (adj @ h) @ W ; else adj @ (h @ W).
    adj_first = tuple(fout > fin for fin, fout in dims)

    kernel = _make_teacher_kernel(adj_first, use_bf16)

    # VMEM budget from the actual padded buffers (inputs, weights, outputs,
    # intermediates) with 2x + slack headroom.
    buf_elems = (Np * Np + Np * pin0
                 + sum(pi * po + po for pi, po in zip(pins, pouts))
                 + 2 * sum(Np * po for po in pouts))
    buf_bytes = 4 * buf_elems
    vmem_limit = int(min(max(2 * buf_bytes + (4 << 20), 16 << 20), 100 << 20))

    flops = sum(2 * Np * pi * po + 2 * Np * Np * (pi if af else po)
                for (pi, po), af in zip(zip(pins, pouts), adj_first))

    call = pl.pallas_call(
        kernel,
        out_shape=(
            jax.ShapeDtypeStruct((Np, pouts[1]), jnp.float32),   # embedding
            jax.ShapeDtypeStruct((Np, pouts[3]), jnp.float32),   # super_resolved
        ),
        in_specs=[pl.BlockSpec(memory_space=pltpu.MemorySpace.VMEM)] * 10,
        out_specs=(
            pl.BlockSpec(memory_space=pltpu.MemorySpace.VMEM),
            pl.BlockSpec(memory_space=pltpu.MemorySpace.VMEM),
        ),
        compiler_params=pltpu.CompilerParams(vmem_limit_bytes=vmem_limit),
        cost_estimate=pl.CostEstimate(flops=int(flops), transcendentals=0,
                                      bytes_accessed=int(buf_bytes)),
    )

    @jax.jit
    def forward(packed, x, adj):
        xp = _pad2(x.astype(jnp.float32), Np, pin0)
        adjp = _pad2(adj.astype(jnp.float32), Np, Np)
        emb_p, out_p = call(xp, adjp, *packed)
        return emb_p[:N, :nhid2], out_p[:N, :nhid4]

    return forward


def init_gcn_params(key, in_features, out_features):
    """Mimic GCN.reset_parameters: uniform(-stdv, stdv), stdv = 1/sqrt(out)."""
    stdv = 1.0 / math.sqrt(out_features)
    kw, kb = jax.random.split(key)
    w = jax.random.uniform(kw, (in_features, out_features), jnp.float32, -stdv, stdv)
    b = jax.random.uniform(kb, (out_features,), jnp.float32, -stdv, stdv)
    return w, b


def init_teacher_params(key, nfeat, nhid1, nhid2, nhid3, nhid4):
    keys = jax.random.split(key, 4)
    return {
        "enc_gc1": init_gcn_params(keys[0], nfeat, nhid1),
        "enc_gc2": init_gcn_params(keys[1], nhid1, nhid2),
        "dec_gc1": init_gcn_params(keys[2], nhid2, nhid3),
        "dec_gc2": init_gcn_params(keys[3], nhid3, nhid4),
    }


if __name__ == "__main__":
    # Small shapes consistent with the module: N graph nodes, feature dims.
    N, nfeat, nhid1, nhid2, nhid3, nhid4 = 8, 16, 32, 16, 32, 16
    dropout = 0.5  # unused at inference

    key = jax.random.PRNGKey(0)
    kp, kx, ka = jax.random.split(key, 3)

    params = init_teacher_params(kp, nfeat, nhid1, nhid2, nhid3, nhid4)

    x = jax.random.normal(kx, (N, nfeat), jnp.float32)
    # Symmetric, row-normalized dense adjacency with self-loops.
    a = jax.random.uniform(ka, (N, N), jnp.float32)
    a = (a + a.T) * 0.5 + jnp.eye(N, dtype=jnp.float32)
    adj = a / jnp.sum(a, axis=1, keepdims=True)

    # Pad + cast weights/biases ONCE; reused across all forward calls.
    packed, dims = pack_teacher_params(params)

    # f32-operand path: exact parity with the f32 PyTorch module.
    fwd_f32 = make_teacher_forward(N, dims, use_bf16=False)
    embedding, super_resolved = fwd_f32(packed, x, adj)
    jax.block_until_ready((embedding, super_resolved))

    assert embedding.shape == (N, nhid2)
    assert super_resolved.shape == (N, nhid4)

    # Plain-JAX reference of the same (unpadded) math.
    def ref_layer(x_, adj_, w, b):
        return jnp.maximum(adj_ @ (x_ @ w) + b, 0.0)

    h = ref_layer(x, adj, *params["enc_gc1"])
    emb_ref = ref_layer(h, adj, *params["enc_gc2"])
    d = ref_layer(emb_ref, adj, *params["dec_gc1"])
    out_ref = ref_layer(d, adj, *params["dec_gc2"])

    assert jnp.allclose(embedding, emb_ref, atol=1e-4, rtol=1e-4)
    assert jnp.allclose(super_resolved, out_ref, atol=1e-4, rtol=1e-4)

    # bf16 MXU-operand path (the v6e/v7x lever); looser tolerance vs f32 ref.
    fwd_bf16 = make_teacher_forward(N, dims, use_bf16=True)
    emb_bf16, out_bf16 = fwd_bf16(packed, x, adj)
    jax.block_until_ready((emb_bf16, out_bf16))
    assert jnp.allclose(emb_bf16, emb_ref, atol=5e-2, rtol=5e-2)
    assert jnp.allclose(out_bf16, out_ref, atol=5e-2, rtol=5e-2)

    print("KERNEL_OK")
</pallas_src>

<mosaic_0001>
module attributes {stable_mosaic.version = 11 : i64} {
  func.func @kernel(%arg0: memref<128x128xf32, #tpu.memory_space<vmem>>, %arg1: memref<128x128xf32, #tpu.memory_space<vmem>>, %arg2: memref<128x128xf32, #tpu.memory_space<vmem>>, %arg3: memref<1x128xf32, #tpu.memory_space<vmem>>, %arg4: memref<128x128xf32, #tpu.memory_space<vmem>>, %arg5: memref<1x128xf32, #tpu.memory_space<vmem>>, %arg6: memref<128x128xf32, #tpu.memory_space<vmem>>, %arg7: memref<1x128xf32, #tpu.memory_space<vmem>>, %arg8: memref<128x128xf32, #tpu.memory_space<vmem>>, %arg9: memref<1x128xf32, #tpu.memory_space<vmem>>, %arg10: memref<128x128xf32, #tpu.memory_space<vmem>>, %arg11: memref<128x128xf32, #tpu.memory_space<vmem>>) attributes {dimension_semantics = [], scalar_prefetch = 0 : i64, scratch_operands = 0 : i64, tpu.core_type = #tpu.core_type<tc>} {
    %c0 = arith.constant 0 : index
    %c0_0 = arith.constant 0 : index
    %0 = vector.load %arg1[%c0, %c0_0] : memref<128x128xf32, #tpu.memory_space<vmem>>, vector<128x128xf32>
    %c0_1 = arith.constant 0 : index
    %c0_2 = arith.constant 0 : index
    %1 = vector.load %arg0[%c0_1, %c0_2] : memref<128x128xf32, #tpu.memory_space<vmem>>, vector<128x128xf32>
    %c0_3 = arith.constant 0 : index
    %c0_4 = arith.constant 0 : index
    %2 = vector.load %arg2[%c0_3, %c0_4] : memref<128x128xf32, #tpu.memory_space<vmem>>, vector<128x128xf32>
    %cst = arith.constant dense<0.000000e+00> : vector<128x128xf32>
    %3 = tpu.matmul %0, %1, %cst {dimension_numbers = #tpu.dot_dimension_numbers<[1], [0], [0], [1], [0, 0, 1, 1], [], []>} : vector<128x128xf32>, vector<128x128xf32>, vector<128x128xf32> -> vector<128x128xf32>
    %cst_5 = arith.constant dense<0.000000e+00> : vector<128x128xf32>
    %4 = tpu.matmul %3, %2, %cst_5 {dimension_numbers = #tpu.dot_dimension_numbers<[1], [0], [0], [1], [0, 0, 1, 1], [], []>} : vector<128x128xf32>, vector<128x128xf32>, vector<128x128xf32> -> vector<128x128xf32>
    %c0_6 = arith.constant 0 : index
    %c0_7 = arith.constant 0 : index
    %5 = vector.load %arg3[%c0_6, %c0_7] : memref<1x128xf32, #tpu.memory_space<vmem>>, vector<1x128xf32>
    %6 = vector.broadcast %5 : vector<1x128xf32> to vector<128x128xf32>
    %7 = arith.addf %4, %6 : vector<128x128xf32>
    %cst_8 = arith.constant 0.000000e+00 : f32
    %8 = vector.broadcast %cst_8 : f32 to vector<128x128xf32>
    %9 = arith.maximumf %7, %8 : vector<128x128xf32>
    %c0_9 = arith.constant 0 : index
    %c0_10 = arith.constant 0 : index
    %10 = vector.load %arg4[%c0_9, %c0_10] : memref<128x128xf32, #tpu.memory_space<vmem>>, vector<128x128xf32>
    %cst_11 = arith.constant dense<0.000000e+00> : vector<128x128xf32>
    %11 = tpu.matmul %9, %10, %cst_11 {dimension_numbers = #tpu.dot_dimension_numbers<[1], [0], [0], [1], [0, 0, 1, 1], [], []>} : vector<128x128xf32>, vector<128x128xf32>, vector<128x128xf32> -> vector<128x128xf32>
    %cst_12 = arith.constant dense<0.000000e+00> : vector<128x128xf32>
    %12 = tpu.matmul %0, %11, %cst_12 {dimension_numbers = #tpu.dot_dimension_numbers<[1], [0], [0], [1], [0, 0, 1, 1], [], []>} : vector<128x128xf32>, vector<128x128xf32>, vector<128x128xf32> -> vector<128x128xf32>
    %c0_13 = arith.constant 0 : index
    %c0_14 = arith.constant 0 : index
    %13 = vector.load %arg5[%c0_13, %c0_14] : memref<1x128xf32, #tpu.memory_space<vmem>>, vector<1x128xf32>
    %14 = vector.broadcast %13 : vector<1x128xf32> to vector<128x128xf32>
    %15 = arith.addf %12, %14 : vector<128x128xf32>
    %cst_15 = arith.constant 0.000000e+00 : f32
    %16 = vector.broadcast %cst_15 : f32 to vector<128x128xf32>
    %17 = arith.maximumf %15, %16 : vector<128x128xf32>
    %c0_16 = arith.constant 0 : index
    %c0_17 = arith.constant 0 : index
    %18 = vector.load %arg10[%c0_16, %c0_17] : memref<128x128xf32, #tpu.memory_space<vmem>>, vector<128x128xf32>
    tpu.vector_store %arg10[%c0_16, %c0_17], %17 {strides = array<i32>} : memref<128x128xf32, #tpu.memory_space<vmem>>, vector<128x128xf32>,
    %c0_18 = arith.constant 0 : index
    %c0_19 = arith.constant 0 : index
    %19 = vector.load %arg6[%c0_18, %c0_19] : memref<128x128xf32, #tpu.memory_space<vmem>>, vector<128x128xf32>
    %cst_20 = arith.constant dense<0.000000e+00> : vector<128x128xf32>
    %20 = tpu.matmul %0, %17, %cst_20 {dimension_numbers = #tpu.dot_dimension_numbers<[1], [0], [0], [1], [0, 0, 1, 1], [], []>} : vector<128x128xf32>, vector<128x128xf32>, vector<128x128xf32> -> vector<128x128xf32>
    %cst_21 = arith.constant dense<0.000000e+00> : vector<128x128xf32>
    %21 = tpu.matmul %20, %19, %cst_21 {dimension_numbers = #tpu.dot_dimension_numbers<[1], [0], [0], [1], [0, 0, 1, 1], [], []>} : vector<128x128xf32>, vector<128x128xf32>, vector<128x128xf32> -> vector<128x128xf32>
    %c0_22 = arith.constant 0 : index
    %c0_23 = arith.constant 0 : index
    %22 = vector.load %arg7[%c0_22, %c0_23] : memref<1x128xf32, #tpu.memory_space<vmem>>, vector<1x128xf32>
    %23 = vector.broadcast %22 : vector<1x128xf32> to vector<128x128xf32>
    %24 = arith.addf %21, %23 : vector<128x128xf32>
    %cst_24 = arith.constant 0.000000e+00 : f32
    %25 = vector.broadcast %cst_24 : f32 to vector<128x128xf32>
    %26 = arith.maximumf %24, %25 : vector<128x128xf32>
    %c0_25 = arith.constant 0 : index
    %c0_26 = arith.constant 0 : index
    %27 = vector.load %arg8[%c0_25, %c0_26] : memref<128x128xf32, #tpu.memory_space<vmem>>, vector<128x128xf32>
    %cst_27 = arith.constant dense<0.000000e+00> : vector<128x128xf32>
    %28 = tpu.matmul %26, %27, %cst_27 {dimension_numbers = #tpu.dot_dimension_numbers<[1], [0], [0], [1], [0, 0, 1, 1], [], []>} : vector<128x128xf32>, vector<128x128xf32>, vector<128x128xf32> -> vector<128x128xf32>
    %cst_28 = arith.constant dense<0.000000e+00> : vector<128x128xf32>
    %29 = tpu.matmul %0, %28, %cst_28 {dimension_numbers = #tpu.dot_dimension_numbers<[1], [0], [0], [1], [0, 0, 1, 1], [], []>} : vector<128x128xf32>, vector<128x128xf32>, vector<128x128xf32> -> vector<128x128xf32>
    %c0_29 = arith.constant 0 : index
    %c0_30 = arith.constant 0 : index
    %30 = vector.load %arg9[%c0_29, %c0_30] : memref<1x128xf32, #tpu.memory_space<vmem>>, vector<1x128xf32>
    %31 = vector.broadcast %30 : vector<1x128xf32> to vector<128x128xf32>
    %32 = arith.addf %29, %31 : vector<128x128xf32>
    %cst_31 = arith.constant 0.000000e+00 : f32
    %33 = vector.broadcast %cst_31 : f32 to vector<128x128xf32>
    %34 = arith.maximumf %32, %33 : vector<128x128xf32>
    %c0_32 = arith.constant 0 : index
    %c0_33 = arith.constant 0 : index
    %35 = vector.load %arg11[%c0_32, %c0_33] : memref<128x128xf32, #tpu.memory_space<vmem>>, vector<128x128xf32>
    tpu.vector_store %arg11[%c0_32, %c0_33], %34 {strides = array<i32>} : memref<128x128xf32, #tpu.memory_space<vmem>>, vector<128x128xf32>,
    return
  }
}

</mosaic_0001>

<bundles_post_ra>
// kernel: forward.1
= control target key start
LH: loop header
LB: loop body
LE: loop exit
PB: predicated region body
PF: predicated region fallthrough
CT: control target
= control target key end

     0   :  { %17 = vsyncpa [#allocation3], 0  ;;  %s3018_s0 = inlined_call_operand.vmem [shape: f32[128,128], index: 0, kind: input, shape index: {}]   ;;  %s3019_s1 = inlined_call_operand.vmem [shape: f32[128,128], index: 1, kind: input, shape index: {}]   ;;  %s3020_s2 = inlined_call_operand.vmem [shape: f32[128,128], index: 2, kind: input, shape index: {}]   ;;  %s3021_s3 = inlined_call_operand.vmem [shape: f32[1,128], index: 3, kind: input, shape index: {}]   ;;  %s3022_s4 = inlined_call_operand.vmem [shape: f32[128,128], index: 4, kind: input, shape index: {}]   ;;  %s3023_s5 = inlined_call_operand.vmem [shape: f32[1,128], index: 5, kind: input, shape index: {}]   ;;  %s3024_s6 = inlined_call_operand.hbm [shape: f32[128,128], index: 6, kind: input, shape index: {}]   ;;  %s3025_s7 = inlined_call_operand.vmem [shape: f32[1,128], index: 7, kind: input, shape index: {}]   ;;  %s3026_s8 = inlined_call_operand.hbm [shape: f32[128,128], index: 8, kind: input, shape index: {}]   ;;  %s3027_s9 = inlined_call_operand.vmem [shape: f32[1,128], index: 9, kind: input, shape index: {}]   ;;  %s3028_s10 = inlined_call_operand.vmem [shape: f32[128,128], index: 10, kind: output, shape index: {0}]   ;;  %s3029_s11 = inlined_call_operand.vmem [shape: f32[128,128], index: 11, kind: output, shape index: {1}]  }
   0x1   :  { %18 = vsyncpa [#allocation5], 0  ;;  %s2486_s17 = smov [#allocation2]   ;;  %s2438_s21 = scalar_lea.hbm %s3024_s6, 2048 }
   0x2   :  { %s36_s18 = sshll.u32 %s2486_s17, 4  ;;  %p2439_p0 = scmp.ne.s32.totalorder %s3024_s6, %s2438_s21  ;;  %s37_s18 = int_to_ptr.vmem [resolvable:$true] %s36_s18 }
   0x3   :  { %p2442_p1 = scmp.lt.u32.totalorder %s2438_s21, %s3024_s6 }
   0x5   :  { %p2444_p2 = pnand %p2442_p1, %p2439_p0 }
   0x7   :  { %2447 = shalt.err (!%p2444_p2)
}
   0x8   :  { %s2448_s26 = scalar_lea.vmem %s37_s18, 2048  ;;  %p2453_p4 = scmp.lt.s32.totalorder %s37_s18, %s37_s18 }
   0x9   :  { %p2449_p3 = scmp.ne.s32.totalorder %s37_s18, %s2448_s26  ;;  %p2454_p5 = scmp.lt.s32.totalorder %s2448_s26, %s2448_s26 }
   0xb   :  { %p2455_p6 = por %p2454_p5, %p2453_p4 }
   0xd   :  { %p2456_p7 = pnand %p2455_p6, %p2449_p3 }
   0xf   :  { %2459 = shalt.err (!%p2456_p7)
}
  0x10   :  { %s2487_s27 = smov 128   ;;  %s2488_s28 = smov 8  }
  0x11   :  { %42 = dma.hbm_to_vmem [thread:$0]  %s3024_s6, 2048, %s37_s18, [#allocation3], %s2487_s27, %s2487_s27, %s2488_s28  }
  0x12   :  { %s2489_s12 = smov [#allocation4]   ;;  %s2460_s16 = scalar_lea.hbm %s3026_s8, 2048 }
  0x13   :  { %s50_s13 = sshll.u32 %s2489_s12, 4  ;;  %p2461_p8 = scmp.ne.s32.totalorder %s3026_s8, %s2460_s16  ;;  %s51_s13 = int_to_ptr.vmem [resolvable:$true] %s50_s13 }
  0x14   :  { %p2464_p9 = scmp.lt.u32.totalorder %s2460_s16, %s3026_s8 }
  0x16   :  { %p2466_p10 = pnand %p2464_p9, %p2461_p8 }
  0x18   :  { %2469 = shalt.err (!%p2466_p10)
}
  0x19   :  { %s2470_s22 = scalar_lea.vmem %s51_s13, 2048  ;;  %p2475_p12 = scmp.lt.s32.totalorder %s51_s13, %s51_s13 }
  0x1a   :  { %p2471_p11 = scmp.ne.s32.totalorder %s51_s13, %s2470_s22  ;;  %p2476_p13 = scmp.lt.s32.totalorder %s2470_s22, %s2470_s22 }
  0x1c   :  { %p2477_p0 = por %p2476_p13, %p2475_p12 }
  0x1e   :  { %p2478_p1 = pnand %p2477_p0, %p2471_p11 }
  0x20   :  { %2481 = shalt.err (!%p2478_p1)
}
  0x21   :  { %56 = dma.hbm_to_vmem [thread:$0]  %s3026_s8, 2048, %s51_s13, [#allocation5], %s2487_s27, %s2487_s27, %s2488_s28  }
  0x22   :  { %2482 = dma.done.wait [#allocation3], 2048  }
  0x23   :  { %2483 = vsyncadd [#allocation3], 4294965248 }
  0x24   :  { %2484 = dma.done.wait [#allocation5], 2048  }
  0x25   :  { %2485 = vsyncadd [#allocation5], 4294965248  ;;  %v81_v0 = vld [vmem:[%s3018_s0] sm:$0xff]  ;;  %v82_v1 = vld [vmem:[%s3018_s0 + $0x8] sm:$0xff] }
  0x26   :  { %v83_v2 = vld [vmem:[%s3018_s0 + $0x10] sm:$0xff]  ;;  %v2163_v3 = vpack.c.bf16 %v82_v1, %v81_v0  ;;  %v84_v4 = vld [vmem:[%s3018_s0 + $0x18] sm:$0xff]  ;;  %v85_v6 = vld [vmem:[%s3018_s0 + $0x20] sm:$0xff] }
  0x27   :  { %v2167_v5 = vpack.c.bf16 %v84_v4, %v83_v2  ;;  %v86_v7 = vld [vmem:[%s3018_s0 + $0x28] sm:$0xff]  ;;  %v2595_v9 = vld [vmem:[%s3019_s1] sm:$0xff]  ;;  %v87_v10 = vld [vmem:[%s3018_s0 + $0x30] sm:$0xff] }
  0x28   :  { %2164 = vmatprep.subr.bf16.mxu0 %v2163_v3  ;;  %v2171_v8 = vpack.c.bf16 %v86_v7, %v85_v6  ;;  %v88_v11 = vld [vmem:[%s3018_s0 + $0x38] sm:$0xff]  ;;  %1747 = vmatprep.mubr.f32.mxu0 %v2595_v9  ;;  %v89_v13 = vld [vmem:[%s3018_s0 + $0x40] sm:$0xff]  ;;  %v90_v14 = vld [vmem:[%s3018_s0 + $0x48] sm:$0xff] }
  0x29   :  { %2166 = vmatpush3.bf16.msra.mxu0 %v2163_v3  ;;  %v2175_v12 = vpack.c.bf16 %v88_v11, %v87_v10  ;;  %v97_v15 = vld [vmem:[%s3020_s2] sm:$0xff]  ;;  %v98_v16 = vld [vmem:[%s3020_s2 + $0x8] sm:$0xff]  ;;  %v99_v17 = vld [vmem:[%s3020_s2 + $0x10] sm:$0xff]  ;;  %v2179_v21 = vpack.c.bf16 %v90_v14, %v89_v13 }
  0x2a   :  { %2168 = vmatprep.subr.bf16.mxu0 %v2167_v5  ;;  %v100_v18 = vld [vmem:[%s3020_s2 + $0x18] sm:$0xff]  ;;  %v2195_v19 = vpack.c.bf16 %v98_v16, %v97_v15  ;;  %v101_v22 = vld [vmem:[%s3020_s2 + $0x20] sm:$0xff]  ;;  %v102_v23 = vld [vmem:[%s3020_s2 + $0x28] sm:$0xff] }
  0x2b   :  { %v2199_v20 = vpack.c.bf16 %v100_v18, %v99_v17  ;;  %v91_v24 = vld [vmem:[%s3018_s0 + $0x50] sm:$0xff]  ;;  %v92_v25 = vld [vmem:[%s3018_s0 + $0x58] sm:$0xff]  ;;  %v2203_v26 = vpack.c.bf16 %v102_v23, %v101_v22  ;;  %v93_v30 = vld [vmem:[%s3018_s0 + $0x60] sm:$0xff] }
  0x2c   :  { %2196 = vmatprep.subr.bf16.mxu1 %v2195_v19  ;;  %v2183_v27 = vpack.c.bf16 %v92_v25, %v91_v24  ;;  %v103_v28 = vld [vmem:[%s3020_s2 + $0x30] sm:$0xff]  ;;  %v104_v29 = vld [vmem:[%s3020_s2 + $0x38] sm:$0xff]  ;;  %v94_v31 = vld [vmem:[%s3018_s0 + $0x68] sm:$0xff] }
  0x2d   :  { %2170 = vmatpush3.bf16.msra.mxu0 %v2167_v5  ;;  %2198 = vmatpush3.bf16.msra.mxu1 %v2195_v19  ;;  %v2207_v32 = vpack.c.bf16 %v104_v29, %v103_v28  ;;  %v2187_v33 = vpack.c.bf16 %v94_v31, %v93_v30  ;;  %v105_v34 = vld [vmem:[%s3020_s2 + $0x40] sm:$0xff]  ;;  %v106_v35 = vld [vmem:[%s3020_s2 + $0x48] sm:$0xff]  ;;  %v95_v36 = vld [vmem:[%s3018_s0 + $0x70] sm:$0xff] }
  0x2e   :  { %2172 = vmatprep.subr.bf16.mxu0 %v2171_v8  ;;  %2200 = vmatprep.subr.bf16.mxu1 %v2199_v20  ;;  %v96_v37 = vld [vmem:[%s3018_s0 + $0x78] sm:$0xff]  ;;  %v2211_v38 = vpack.c.bf16 %v106_v35, %v105_v34  ;;  %v107_v40 = vld [vmem:[%s3020_s2 + $0x50] sm:$0xff]  ;;  %v109_v43 = vld [vmem:[%s3020_s2 + $0x60] sm:$0xff] }
  0x2f   :  { %v2191_v39 = vpack.c.bf16 %v96_v37, %v95_v36  ;;  %v108_v41 = vld [vmem:[%s3020_s2 + $0x58] sm:$0xff]  ;;  %v110_v44 = vld [vmem:[%s3020_s2 + $0x68] sm:$0xff]  ;;  %v2678_v47 = vld [vmem:[%s3019_s1 + $0x10] sm:$0xff] }
  0x30   :  { %v2215_v42 = vpack.c.bf16 %v108_v41, %v107_v40  ;;  %v2673_v45 = vld [vmem:[%s3019_s1 + $0x8] sm:$0xff]  ;;  %v2219_v46 = vpack.c.bf16 %v110_v44, %v109_v43  ;;  %v111_v48 = vld [vmem:[%s3020_s2 + $0x70] sm:$0xff]  ;;  %v112_v49 = vld [vmem:[%s3020_s2 + $0x78] sm:$0xff] }
  0x31   :  { %2174 = vmatpush3.bf16.msra.mxu0 %v2171_v8  ;;  %2202 = vmatpush3.bf16.msra.mxu1 %v2199_v20  ;;  %v2691_v50 = vld [vmem:[%s3019_s1 + $0x18] sm:$0xff]  ;;  %v2223_v51 = vpack.c.bf16 %v112_v49, %v111_v48  ;;  %v2696_v52 = vld [vmem:[%s3019_s1 + $0x20] sm:$0xff]  ;;  %v2703_v53 = vld [vmem:[%s3019_s1 + $0x28] sm:$0xff] }
  0x32   :  { %2176 = vmatprep.subr.bf16.mxu0 %v2175_v12  ;;  %2204 = vmatprep.subr.bf16.mxu1 %v2203_v26  ;;  %v2708_v54 = vld [vmem:[%s3019_s1 + $0x30] sm:$0xff]  ;;  %v2715_v55 = vld [vmem:[%s3019_s1 + $0x38] sm:$0xff]  ;;  %v2720_v56 = vld [vmem:[%s3019_s1 + $0x40] sm:$0xff] }
  0x33   :  { %v2727_v57 = vld [vmem:[%s3019_s1 + $0x48] sm:$0xff]  ;;  %v2732_v58 = vld [vmem:[%s3019_s1 + $0x50] sm:$0xff]  ;;  %v2739_v59 = vld [vmem:[%s3019_s1 + $0x58] sm:$0xff] }
  0x34   :  { %v2744_v60 = vld [vmem:[%s3019_s1 + $0x60] sm:$0xff]  ;;  %v2751_v61 = vld [vmem:[%s3019_s1 + $0x68] sm:$0xff]  ;;  %v2756_v62 = vld [vmem:[%s3019_s1 + $0x70] sm:$0xff] }
  0x35   :  { %2178 = vmatpush3.bf16.msra.mxu0 %v2175_v12  ;;  %2206 = vmatpush3.bf16.msra.mxu1 %v2203_v26  ;;  %v2763_v63 = vld [vmem:[%s3019_s1 + $0x78] sm:$0xff]  ;;  %v426_v0 = vld [vmem:[%s3022_s4] sm:$0xff]  ;;  %v427_v1 = vld [vmem:[%s3022_s4 + $0x8] sm:$0xff] }
  0x36   :  { %2180 = vmatprep.subr.bf16.mxu0 %v2179_v21  ;;  %2208 = vmatprep.subr.bf16.mxu1 %v2207_v32  ;;  %v428_v2 = vld [vmem:[%s3022_s4 + $0x10] sm:$0xff]  ;;  %v2227_v3 = vpack.c.bf16 %v427_v1, %v426_v0  ;;  %v429_v4 = vld [vmem:[%s3022_s4 + $0x18] sm:$0xff]  ;;  %v430_v6 = vld [vmem:[%s3022_s4 + $0x20] sm:$0xff] }
  0x37   :  { %v2231_v5 = vpack.c.bf16 %v429_v4, %v428_v2  ;;  %v431_v7 = vld [vmem:[%s3022_s4 + $0x28] sm:$0xff]  ;;  %v432_v10 = vld [vmem:[%s3022_s4 + $0x30] sm:$0xff]  ;;  %v433_v11 = vld [vmem:[%s3022_s4 + $0x38] sm:$0xff] }
  0x38   :  { %v2235_v8 = vpack.c.bf16 %v431_v7, %v430_v6  ;;  %v2239_v12 = vpack.c.bf16 %v433_v11, %v432_v10  ;;  %v434_v13 = vld [vmem:[%s3022_s4 + $0x40] sm:$0xff]  ;;  %v435_v14 = vld [vmem:[%s3022_s4 + $0x48] sm:$0xff]  ;;  %v436_v16 = vld [vmem:[%s3022_s4 + $0x50] sm:$0xff] }
  0x39   :  { %2182 = vmatpush3.bf16.msra.mxu0 %v2179_v21  ;;  %2210 = vmatpush3.bf16.msra.mxu1 %v2207_v32  ;;  %v2243_v15 = vpack.c.bf16 %v435_v14, %v434_v13  ;;  %v437_v17 = vld [vmem:[%s3022_s4 + $0x58] sm:$0xff]  ;;  %v438_v19 = vld [vmem:[%s3022_s4 + $0x60] sm:$0xff]  ;;  %v439_v20 = vld [vmem:[%s3022_s4 + $0x68] sm:$0xff] }
  0x3a   :  { %2184 = vmatprep.subr.bf16.mxu0 %v2183_v27  ;;  %2212 = vmatprep.subr.bf16.mxu1 %v2211_v38  ;;  %v2247_v18 = vpack.c.bf16 %v437_v17, %v436_v16  ;;  %v2251_v21 = vpack.c.bf16 %v439_v20, %v438_v19  ;;  %v1455_v41 = vld [vmem:[%s3021_s3] ss:$0 sm:$0xff] }
  0x3d   :  { %2186 = vmatpush3.bf16.msra.mxu0 %v2183_v27  ;;  %2214 = vmatpush3.bf16.msra.mxu1 %v2211_v38  ;;  %v440_v38 = vld [vmem:[%s3022_s4 + $0x70] sm:$0xff] }
  0x3e   :  { %2188 = vmatprep.subr.bf16.mxu0 %v2187_v33  ;;  %2216 = vmatprep.subr.bf16.mxu1 %v2215_v42 }
  0x41   :  { %2190 = vmatpush3.bf16.msra.mxu0 %v2187_v33  ;;  %2218 = vmatpush3.bf16.msra.mxu1 %v2215_v42 }
  0x42   :  { %2192 = vmatprep.subr.bf16.mxu0 %v2191_v39  ;;  %2220 = vmatprep.subr.bf16.mxu1 %v2219_v46 }
  0x45   :  { %2194 = vmatpush3.bf16.msra.mxu0 %v2191_v39  ;;  %2222 = vmatpush3.bf16.msra.mxu1 %v2219_v46  ;;  %v441_v39 = vld [vmem:[%s3022_s4 + $0x78] sm:$0xff] }
  0x46   :  { %2224 = vmatprep.subr.bf16.mxu1 %v2223_v51  ;;  %2228 = vmatprep.subr.bf16.mxu0 %v2227_v3  ;;  %v2255_v40 = vpack.c.bf16 %v441_v39, %v440_v38 }
  0x48   :  { %1748 = vmatmul.mubr.f32.vlgmr.msra.gmra.mrb[0].mxu0 %v2673_v45 }
  0x49   :  { %1750 = vmatprep.mubr.f32.mxu0 %v2678_v47  ;;  %2226 = vmatpush3.bf16.msra.mxu1 %v2223_v51 }
  0x4a   :  { %2230 = vmatpush3.bf16.msra.mxu0 %v2227_v3 }
  0x4b   :  { %2232 = vmatprep.subr.bf16.mxu0 %v2231_v5 }
  0x4c   :  { %1751 = vmatmul.mubr.f32.gmra.mrb[2].mxu0 %v2691_v50 }
  0x4d   :  { %1753 = vmatprep.mubr.f32.mxu0 %v2696_v52 }
  0x4e   :  { %2234 = vmatpush3.bf16.msra.mxu0 %v2231_v5 }
  0x4f   :  { %2236 = vmatprep.subr.bf16.mxu0 %v2235_v8 }
  0x50   :  { %1754 = vmatmul.mubr.f32.gmra.mrb[4].mxu0 %v2703_v53 }
  0x51   :  { %1756 = vmatprep.mubr.f32.mxu0 %v2708_v54 }
  0x52   :  { %2238 = vmatpush3.bf16.msra.mxu0 %v2235_v8 }
  0x53   :  { %2240 = vmatprep.subr.bf16.mxu0 %v2239_v12 }
  0x54   :  { %1757 = vmatmul.mubr.f32.gmra.mrb[6].mxu0 %v2715_v55 }
  0x55   :  { %1759 = vmatprep.mubr.f32.mxu0 %v2720_v56 }
  0x56   :  { %2242 = vmatpush3.bf16.msra.mxu0 %v2239_v12 }
  0x57   :  { %2244 = vmatprep.subr.bf16.mxu0 %v2243_v15 }
  0x58   :  { %1760 = vmatmul.mubr.f32.gmra.mrb[8].mxu0 %v2727_v57 }
  0x59   :  { %1762 = vmatprep.mubr.f32.mxu0 %v2732_v58 }
  0x5a   :  { %2246 = vmatpush3.bf16.msra.mxu0 %v2243_v15 }
  0x5b   :  { %2248 = vmatprep.subr.bf16.mxu0 %v2247_v18 }
  0x5c   :  { %1763 = vmatmul.mubr.f32.gmra.mrb[10].mxu0 %v2739_v59 }
  0x5d   :  { %1765 = vmatprep.mubr.f32.mxu0 %v2744_v60 }
  0x5e   :  { %2250 = vmatpush3.bf16.msra.mxu0 %v2247_v18 }
  0x5f   :  { %2252 = vmatprep.subr.bf16.mxu0 %v2251_v21 }
  0x60   :  { %1766 = vmatmul.mubr.f32.gmra.mrb[12].mxu0 %v2751_v61 }
  0x61   :  { %1768 = vmatprep.mubr.f32.mxu0 %v2756_v62 }
  0x62   :  { %2254 = vmatpush3.bf16.msra.mxu0 %v2251_v21 }
  0x63   :  { %2256 = vmatprep.subr.bf16.mxu0 %v2255_v40 }
  0x64   :  { %1769 = vmatmul.mubr.f32.gmra.mrb[14].mxu0 %v2763_v63 }
  0x66   :  { %2258 = vmatpush3.bf16.msra.mxu0 %v2255_v40 }
 0x11b   :  { %v1749_v22 = vpop.f32.mrb[0].mxu0 }
 0x11c   :  { %v179_v23 = vpop.f32.mrb[1].mxu0 }
 0x11d   :  { %1803 = vmatprep.mubr.f32.mxu1 %v179_v23 }
 0x11e   :  { %1804 = vmatmul.mubr.f32.vlgmr.msra.gmra.mrb[0].mxu1 %v1749_v22 }
 0x11f   :  { %v1752_v24 = vpop.f32.mrb[2].mxu0 }
 0x120   :  { %v189_v25 = vpop.f32.mrb[3].mxu0 }
 0x121   :  { %1806 = vmatprep.mubr.f32.mxu1 %v189_v25 }
 0x122   :  { %1807 = vmatmul.mubr.f32.gmra.mrb[2].mxu1 %v1752_v24 }
 0x123   :  { %v1755_v26 = vpop.f32.mrb[4].mxu0 }
 0x124   :  { %v199_v27 = vpop.f32.mrb[5].mxu0 }
 0x125   :  { %1809 = vmatprep.mubr.f32.mxu1 %v199_v27 }
 0x126   :  { %1810 = vmatmul.mubr.f32.gmra.mrb[4].mxu1 %v1755_v26 }
 0x127   :  { %v1758_v28 = vpop.f32.mrb[6].mxu0 }
 0x128   :  { %v209_v29 = vpop.f32.mrb[7].mxu0 }
 0x129   :  { %1812 = vmatprep.mubr.f32.mxu1 %v209_v29 }
 0x12a   :  { %1813 = vmatmul.mubr.f32.gmra.mrb[6].mxu1 %v1758_v28 }
 0x12b   :  { %v1761_v30 = vpop.f32.mrb[8].mxu0 }
 0x12c   :  { %v219_v31 = vpop.f32.mrb[9].mxu0 }
 0x12d   :  { %1815 = vmatprep.mubr.f32.mxu1 %v219_v31 }
 0x12e   :  { %1816 = vmatmul.mubr.f32.gmra.mrb[8].mxu1 %v1761_v30 }
 0x12f   :  { %v1764_v32 = vpop.f32.mrb[10].mxu0 }
 0x130   :  { %v229_v33 = vpop.f32.mrb[11].mxu0 }
 0x131   :  { %1818 = vmatprep.mubr.f32.mxu1 %v229_v33 }
 0x132   :  { %1819 = vmatmul.mubr.f32.gmra.mrb[10].mxu1 %v1764_v32 }
 0x133   :  { %v1767_v34 = vpop.f32.mrb[12].mxu0 }
 0x134   :  { %v239_v35 = vpop.f32.mrb[13].mxu0 }
 0x135   :  { %1821 = vmatprep.mubr.f32.mxu1 %v239_v35 }
 0x136   :  { %1822 = vmatmul.mubr.f32.gmra.mrb[12].mxu1 %v1767_v34 }
 0x137   :  { %v1770_v36 = vpop.f32.mrb[14].mxu0 }
 0x138   :  { %v249_v37 = vpop.f32.mrb[15].mxu0 }
 0x139   :  { %1824 = vmatprep.mubr.f32.mxu1 %v249_v37 }
 0x13a   :  { %1825 = vmatmul.mubr.f32.gmra.mrb[14].mxu1 %v1770_v36 }
 0x13b   :  { %1915 = vmatprep.mubr.f32.mxu1 %v2595_v9 }
 0x1f1   :  { %v1805_v42 = vpop.f32.mrb[0].mxu1 }
 0x1f2   :  { %v337_v43 = vadd.f32 %v1805_v42, %v1455_v41  ;;  %v331_v44 = vpop.f32.mrb[1].mxu1 }
 0x1f3   :  { %v332_v46 = vadd.f32 %v1455_v41, %v331_v44 }
 0x1f4   :  { %v411_v51 = vmax.f32 %v337_v43, 0.0 }
 0x1f5   :  { %v410_v48 = vmax.f32 %v332_v46, 0.0  ;;  %v1808_v49 = vpop.f32.mrb[2].mxu1 }
 0x1f6   :  { %v347_v0 = vadd.f32 %v1808_v49, %v1455_v41  ;;  %v341_v1 = vpop.f32.mrb[3].mxu1 }
 0x1f7   :  { %v342_v2 = vadd.f32 %v1455_v41, %v341_v1  ;;  %1859 = vmatprep.mubr.f32.mxu0 %v410_v48 }
 0x1f8   :  { %1860 = vmatmul.mubr.f32.vlgmr.msra.gmra.mrb[16].mxu0 %v411_v51  ;;  %v413_v5 = vmax.f32 %v347_v0, 0.0 }
 0x1f9   :  { %v412_v3 = vmax.f32 %v342_v2, 0.0  ;;  %v1811_v4 = vpop.f32.mrb[4].mxu1 }
 0x1fa   :  { %v357_v6 = vadd.f32 %v1811_v4, %v1455_v41  ;;  %v351_v7 = vpop.f32.mrb[5].mxu1 }
 0x1fb   :  { %v352_v8 = vadd.f32 %v1455_v41, %v351_v7  ;;  %1862 = vmatprep.mubr.f32.mxu0 %v412_v3 }
 0x1fc   :  { %1863 = vmatmul.mubr.f32.gmra.mrb[18].mxu0 %v413_v5  ;;  %v415_v12 = vmax.f32 %v357_v6, 0.0 }
 0x1fd   :  { %v414_v10 = vmax.f32 %v352_v8, 0.0  ;;  %v1814_v11 = vpop.f32.mrb[6].mxu1 }
 0x1fe   :  { %v367_v13 = vadd.f32 %v1814_v11, %v1455_v41  ;;  %v361_v14 = vpop.f32.mrb[7].mxu1 }
 0x1ff   :  { %v362_v15 = vadd.f32 %v1455_v41, %v361_v14  ;;  %1865 = vmatprep.mubr.f32.mxu0 %v414_v10 }
 0x200   :  { %1866 = vmatmul.mubr.f32.gmra.mrb[20].mxu0 %v415_v12  ;;  %v417_v18 = vmax.f32 %v367_v13, 0.0 }
 0x201   :  { %v416_v16 = vmax.f32 %v362_v15, 0.0  ;;  %v1817_v17 = vpop.f32.mrb[8].mxu1 }
 0x202   :  { %v377_v19 = vadd.f32 %v1817_v17, %v1455_v41  ;;  %v371_v20 = vpop.f32.mrb[9].mxu1 }
 0x203   :  { %v372_v21 = vadd.f32 %v1455_v41, %v371_v20  ;;  %1868 = vmatprep.mubr.f32.mxu0 %v416_v16  ;;  %v773_v20 = vld [vmem:[#allocation2 + $0x10] sm:$0xff] }
 0x204   :  { %1869 = vmatmul.mubr.f32.gmra.mrb[22].mxu0 %v417_v18  ;;  %v419_v24 = vmax.f32 %v377_v19, 0.0  ;;  %v771_v18 = vld [vmem:[#allocation2] sm:$0xff]  ;;  %v772_v19 = vld [vmem:[#allocation2 + $0x8] sm:$0xff] }
 0x205   :  { %v418_v22 = vmax.f32 %v372_v21, 0.0  ;;  %v1820_v23 = vpop.f32.mrb[10].mxu1  ;;  %v2323_v21 = vpack.c.bf16 %v772_v19, %v771_v18 }
 0x206   :  { %v387_v25 = vadd.f32 %v1820_v23, %v1455_v41  ;;  %v381_v26 = vpop.f32.mrb[11].mxu1 }
 0x207   :  { %v382_v27 = vadd.f32 %v1455_v41, %v381_v26  ;;  %1871 = vmatprep.mubr.f32.mxu0 %v418_v22  ;;  %v774_v22 = vld [vmem:[#allocation2 + $0x18] sm:$0xff] }
 0x208   :  { %1872 = vmatmul.mubr.f32.gmra.mrb[24].mxu0 %v419_v24  ;;  %v421_v30 = vmax.f32 %v387_v25, 0.0  ;;  %v2327_v23 = vpack.c.bf16 %v774_v22, %v773_v20  ;;  %v775_v24 = vld [vmem:[#allocation2 + $0x20] sm:$0xff]  ;;  %v776_v25 = vld [vmem:[#allocation2 + $0x28] sm:$0xff] }
 0x209   :  { %v420_v28 = vmax.f32 %v382_v27, 0.0  ;;  %v1823_v29 = vpop.f32.mrb[12].mxu1  ;;  %v2331_v26 = vpack.c.bf16 %v776_v25, %v775_v24  ;;  %v777_v27 = vld [vmem:[#allocation2 + $0x30] sm:$0xff] }
 0x20a   :  { %v397_v31 = vadd.f32 %v1823_v29, %v1455_v41  ;;  %v391_v32 = vpop.f32.mrb[13].mxu1 }
 0x20b   :  { %v392_v33 = vadd.f32 %v1455_v41, %v391_v32  ;;  %1874 = vmatprep.mubr.f32.mxu0 %v420_v28  ;;  %v778_v28 = vld [vmem:[#allocation2 + $0x38] sm:$0xff] }
 0x20c   :  { %1875 = vmatmul.mubr.f32.gmra.mrb[26].mxu0 %v421_v30  ;;  %v423_v36 = vmax.f32 %v397_v31, 0.0  ;;  %v2335_v29 = vpack.c.bf16 %v778_v28, %v777_v27  ;;  %v779_v30 = vld [vmem:[#allocation2 + $0x40] sm:$0xff]  ;;  %v780_v31 = vld [vmem:[#allocation2 + $0x48] sm:$0xff] }
 0x20d   :  { %v422_v34 = vmax.f32 %v392_v33, 0.0  ;;  %v1826_v35 = vpop.f32.mrb[14].mxu1  ;;  %v2339_v32 = vpack.c.bf16 %v780_v31, %v779_v30  ;;  %v781_v33 = vld [vmem:[#allocation2 + $0x50] sm:$0xff] }
 0x20e   :  { %v407_v37 = vadd.f32 %v1826_v35, %v1455_v41  ;;  %v401_v38 = vpop.f32.mrb[15].mxu1 }
 0x20f   :  { %v402_v39 = vadd.f32 %v1455_v41, %v401_v38  ;;  %1877 = vmatprep.mubr.f32.mxu0 %v422_v34  ;;  %v782_v34 = vld [vmem:[#allocation2 + $0x58] sm:$0xff] }
 0x210   :  { %1878 = vmatmul.mubr.f32.gmra.mrb[28].mxu0 %v423_v36  ;;  %v425_v42 = vmax.f32 %v407_v37, 0.0  ;;  %v2343_v35 = vpack.c.bf16 %v782_v34, %v781_v33  ;;  %v783_v36 = vld [vmem:[#allocation2 + $0x60] sm:$0xff]  ;;  %v784_v37 = vld [vmem:[#allocation2 + $0x68] sm:$0xff] }
 0x211   :  { %v424_v40 = vmax.f32 %v402_v39, 0.0  ;;  %v2347_v38 = vpack.c.bf16 %v784_v37, %v783_v36  ;;  %v785_v39 = vld [vmem:[#allocation2 + $0x70] sm:$0xff] }
 0x213   :  { %1880 = vmatprep.mubr.f32.mxu0 %v424_v40  ;;  %v786_v40 = vld [vmem:[#allocation2 + $0x78] sm:$0xff] }
 0x214   :  { %1881 = vmatmul.mubr.f32.gmra.mrb[30].mxu0 %v425_v42  ;;  %v2351_v42 = vpack.c.bf16 %v786_v40, %v785_v39 }
 0x215   :  { %1971 = vmatprep.mubr.f32.mxu0 %v2595_v9 }
 0x2cb   :  { %v1861_v43 = vpop.f32.mrb[16].mxu0 }
 0x2cc   :  { %v508_v44 = vpop.f32.mrb[17].mxu0 }
 0x2cd   :  { %v2259_v46 = vpack.c.bf16 %v1861_v43, %v508_v44  ;;  %v2837_v43 = vld [vmem:[%s3023_s5] ss:$0 sm:$0xff] }
 0x2cf   :  { %v1864_v48 = vpop.f32.mrb[18].mxu0  ;;  %2260 = vmatprep.subr.bf16.mxu1 %v2259_v46 }
 0x2d0   :  { %v518_v49 = vpop.f32.mrb[19].mxu0  ;;  %2262 = vmatpush3.bf16.msra.mxu1 %v2259_v46 }
 0x2d1   :  { %v2263_v51 = vpack.c.bf16 %v1864_v48, %v518_v49 }
 0x2d3   :  { %v1867_v0 = vpop.f32.mrb[20].mxu0  ;;  %2264 = vmatprep.subr.bf16.mxu1 %v2263_v51 }
 0x2d4   :  { %v528_v1 = vpop.f32.mrb[21].mxu0  ;;  %2266 = vmatpush3.bf16.msra.mxu1 %v2263_v51 }
 0x2d5   :  { %v2267_v41 = vpack.c.bf16 %v1867_v0, %v528_v1 }
 0x2d7   :  { %v1870_v2 = vpop.f32.mrb[22].mxu0  ;;  %2268 = vmatprep.subr.bf16.mxu1 %v2267_v41 }
 0x2d8   :  { %v538_v3 = vpop.f32.mrb[23].mxu0  ;;  %2270 = vmatpush3.bf16.msra.mxu1 %v2267_v41 }
 0x2d9   :  { %v2271_v4 = vpack.c.bf16 %v1870_v2, %v538_v3 }
 0x2db   :  { %v1873_v5 = vpop.f32.mrb[24].mxu0  ;;  %2272 = vmatprep.subr.bf16.mxu1 %v2271_v4 }
 0x2dc   :  { %v548_v6 = vpop.f32.mrb[25].mxu0  ;;  %2274 = vmatpush3.bf16.msra.mxu1 %v2271_v4 }
 0x2dd   :  { %v2275_v7 = vpack.c.bf16 %v1873_v5, %v548_v6 }
 0x2df   :  { %v1876_v8 = vpop.f32.mrb[26].mxu0  ;;  %2276 = vmatprep.subr.bf16.mxu1 %v2275_v7 }
 0x2e0   :  { %v558_v10 = vpop.f32.mrb[27].mxu0  ;;  %2278 = vmatpush3.bf16.msra.mxu1 %v2275_v7 }
 0x2e1   :  { %v2279_v11 = vpack.c.bf16 %v1876_v8, %v558_v10 }
 0x2e3   :  { %v1879_v12 = vpop.f32.mrb[28].mxu0  ;;  %2280 = vmatprep.subr.bf16.mxu1 %v2279_v11 }
 0x2e4   :  { %v568_v13 = vpop.f32.mrb[29].mxu0  ;;  %2282 = vmatpush3.bf16.msra.mxu1 %v2279_v11 }
 0x2e5   :  { %v2283_v14 = vpack.c.bf16 %v1879_v12, %v568_v13 }
 0x2e7   :  { %v1882_v15 = vpop.f32.mrb[30].mxu0  ;;  %2284 = vmatprep.subr.bf16.mxu1 %v2283_v14 }
 0x2e8   :  { %v578_v16 = vpop.f32.mrb[31].mxu0  ;;  %2286 = vmatpush3.bf16.msra.mxu1 %v2283_v14 }
 0x2e9   :  { %v2287_v17 = vpack.c.bf16 %v1882_v15, %v578_v16 }
 0x2eb   :  { %2288 = vmatprep.subr.bf16.mxu1 %v2287_v17 }
 0x2ec   :  { %2290 = vmatpush3.bf16.msra.mxu1 %v2287_v17 }
 0x2ed   :  { %2324 = vmatprep.subr.bf16.mxu1 %v2323_v21 }
 0x2ef   :  { %1916 = vmatmul.mubr.f32.vlgmr.msra.gmra.mrb[16].mxu1 %v2673_v45 }
 0x2f0   :  { %1918 = vmatprep.mubr.f32.mxu1 %v2678_v47  ;;  %2326 = vmatpush3.bf16.msra.mxu1 %v2323_v21 }
 0x2f1   :  { %2328 = vmatprep.subr.bf16.mxu1 %v2327_v23 }
 0x2f3   :  { %1919 = vmatmul.mubr.f32.gmra.mrb[18].mxu1 %v2691_v50 }
 0x2f4   :  { %1921 = vmatprep.mubr.f32.mxu1 %v2696_v52  ;;  %2330 = vmatpush3.bf16.msra.mxu1 %v2327_v23 }
 0x2f5   :  { %2332 = vmatprep.subr.bf16.mxu1 %v2331_v26 }
 0x2f7   :  { %1922 = vmatmul.mubr.f32.gmra.mrb[20].mxu1 %v2703_v53 }
 0x2f8   :  { %1924 = vmatprep.mubr.f32.mxu1 %v2708_v54  ;;  %2334 = vmatpush3.bf16.msra.mxu1 %v2331_v26 }
 0x2f9   :  { %2336 = vmatprep.subr.bf16.mxu1 %v2335_v29 }
 0x2fb   :  { %1925 = vmatmul.mubr.f32.gmra.mrb[22].mxu1 %v2715_v55 }
 0x2fc   :  { %1927 = vmatprep.mubr.f32.mxu1 %v2720_v56  ;;  %2338 = vmatpush3.bf16.msra.mxu1 %v2335_v29 }
 0x2fd   :  { %2340 = vmatprep.subr.bf16.mxu1 %v2339_v32 }
 0x2ff   :  { %1928 = vmatmul.mubr.f32.gmra.mrb[24].mxu1 %v2727_v57 }
 0x300   :  { %1930 = vmatprep.mubr.f32.mxu1 %v2732_v58  ;;  %2342 = vmatpush3.bf16.msra.mxu1 %v2339_v32 }
 0x301   :  { %2344 = vmatprep.subr.bf16.mxu1 %v2343_v35 }
 0x303   :  { %1931 = vmatmul.mubr.f32.gmra.mrb[26].mxu1 %v2739_v59 }
 0x304   :  { %1933 = vmatprep.mubr.f32.mxu1 %v2744_v60  ;;  %2346 = vmatpush3.bf16.msra.mxu1 %v2343_v35 }
 0x305   :  { %2348 = vmatprep.subr.bf16.mxu1 %v2347_v38 }
 0x307   :  { %1934 = vmatmul.mubr.f32.gmra.mrb[28].mxu1 %v2751_v61 }
 0x308   :  { %1936 = vmatprep.mubr.f32.mxu1 %v2756_v62  ;;  %2350 = vmatpush3.bf16.msra.mxu1 %v2347_v38 }
 0x309   :  { %2352 = vmatprep.subr.bf16.mxu1 %v2351_v42 }
 0x30b   :  { %1937 = vmatmul.mubr.f32.gmra.mrb[30].mxu1 %v2763_v63 }
 0x30c   :  { %2354 = vmatpush3.bf16.msra.mxu1 %v2351_v42 }
 0x3c2   :  { %v1917_v44 = vpop.f32.mrb[16].mxu1 }
 0x3c3   :  { %v666_v46 = vadd.f32 %v1917_v44, %v2837_v43  ;;  %v660_v48 = vpop.f32.mrb[17].mxu1 }
 0x3c4   :  { %v661_v49 = vadd.f32 %v2837_v43, %v660_v48 }
 0x3c5   :  { %v740_v51 = vmax.f32 %v666_v46, 0.0 }
 0x3c6   :  { %v739_v0 = vmax.f32 %v661_v49, 0.0  ;;  %v1920_v1 = vpop.f32.mrb[18].mxu1 }
 0x3c7   :  { %756 = vst [vmem:[%s3028_s10 + $0x8] sm:$0xff] %v740_v51  ;;  %v676_v41 = vadd.f32 %v1920_v1, %v2837_v43  ;;  %v670_v2 = vpop.f32.mrb[19].mxu1 }
 0x3c8   :  { %755 = vst [vmem:[%s3028_s10] sm:$0xff] %v739_v0  ;;  %v2291_v3 = vpack.c.bf16 %v740_v51, %v739_v0  ;;  %v671_v4 = vadd.f32 %v2837_v43, %v670_v2 }
 0x3c9   :  { %v742_v5 = vmax.f32 %v676_v41, 0.0 }
 0x3ca   :  { %v741_v6 = vmax.f32 %v671_v4, 0.0  ;;  %v1923_v7 = vpop.f32.mrb[20].mxu1  ;;  %2292 = vmatprep.subr.bf16.mxu0 %v2291_v3 }
 0x3cb   :  { %758 = vst [vmem:[%s3028_s10 + $0x18] sm:$0xff] %v742_v5  ;;  %v686_v8 = vadd.f32 %v1923_v7, %v2837_v43  ;;  %v680_v10 = vpop.f32.mrb[21].mxu1  ;;  %2294 = vmatpush3.bf16.msra.mxu0 %v2291_v3  ;;  %v1111_v3 = vld [vmem:[#allocation4 + $0x58] sm:$0xff] }
 0x3cc   :  { %757 = vst [vmem:[%s3028_s10 + $0x10] sm:$0xff] %v741_v6  ;;  %v2295_v11 = vpack.c.bf16 %v742_v5, %v741_v6  ;;  %v681_v12 = vadd.f32 %v2837_v43, %v680_v10  ;;  %v1112_v5 = vld [vmem:[#allocation4 + $0x60] sm:$0xff]  ;;  %v1113_v6 = vld [vmem:[#allocation4 + $0x68] sm:$0xff] }
 0x3cd   :  { %v744_v13 = vmax.f32 %v686_v8, 0.0  ;;  %v2379_v7 = vpack.c.bf16 %v1113_v6, %v1112_v5 }
 0x3ce   :  { %v743_v14 = vmax.f32 %v681_v12, 0.0  ;;  %v1926_v15 = vpop.f32.mrb[22].mxu1  ;;  %2296 = vmatprep.subr.bf16.mxu0 %v2295_v11 }
 0x3cf   :  { %760 = vst [vmem:[%s3028_s10 + $0x28] sm:$0xff] %v744_v13  ;;  %v696_v16 = vadd.f32 %v1926_v15, %v2837_v43  ;;  %v690_v17 = vpop.f32.mrb[23].mxu1  ;;  %2298 = vmatpush3.bf16.msra.mxu0 %v2295_v11 }
 0x3d0   :  { %759 = vst [vmem:[%s3028_s10 + $0x20] sm:$0xff] %v743_v14  ;;  %v2299_v18 = vpack.c.bf16 %v744_v13, %v743_v14  ;;  %v691_v19 = vadd.f32 %v2837_v43, %v690_v17 }
 0x3d1   :  { %v746_v20 = vmax.f32 %v696_v16, 0.0 }
 0x3d2   :  { %v745_v21 = vmax.f32 %v691_v19, 0.0  ;;  %v1929_v22 = vpop.f32.mrb[24].mxu1  ;;  %2300 = vmatprep.subr.bf16.mxu0 %v2299_v18 }
 0x3d3   :  { %762 = vst [vmem:[%s3028_s10 + $0x38] sm:$0xff] %v746_v20  ;;  %v706_v23 = vadd.f32 %v1929_v22, %v2837_v43  ;;  %v700_v24 = vpop.f32.mrb[25].mxu1  ;;  %2302 = vmatpush3.bf16.msra.mxu0 %v2299_v18 }
 0x3d4   :  { %761 = vst [vmem:[%s3028_s10 + $0x30] sm:$0xff] %v745_v21  ;;  %v2303_v25 = vpack.c.bf16 %v746_v20, %v745_v21  ;;  %v701_v26 = vadd.f32 %v2837_v43, %v700_v24 }
 0x3d5   :  { %v748_v27 = vmax.f32 %v706_v23, 0.0 }
 0x3d6   :  { %v747_v28 = vmax.f32 %v701_v26, 0.0  ;;  %v1932_v29 = vpop.f32.mrb[26].mxu1  ;;  %2304 = vmatprep.subr.bf16.mxu0 %v2303_v25  ;;  %v1115_v26 = vld [vmem:[#allocation4 + $0x78] sm:$0xff] }
 0x3d7   :  { %764 = vst [vmem:[%s3028_s10 + $0x48] sm:$0xff] %v748_v27  ;;  %v716_v30 = vadd.f32 %v1932_v29, %v2837_v43  ;;  %v710_v31 = vpop.f32.mrb[27].mxu1  ;;  %2306 = vmatpush3.bf16.msra.mxu0 %v2303_v25  ;;  %v1114_v25 = vld [vmem:[#allocation4 + $0x70] sm:$0xff] }
 0x3d8   :  { %763 = vst [vmem:[%s3028_s10 + $0x40] sm:$0xff] %v747_v28  ;;  %v2307_v32 = vpack.c.bf16 %v748_v27, %v747_v28  ;;  %v711_v33 = vadd.f32 %v2837_v43, %v710_v31  ;;  %v2383_v27 = vpack.c.bf16 %v1115_v26, %v1114_v25  ;;  %v1457_v28 = vld [vmem:[%s3025_s7] ss:$0 sm:$0xff] }
 0x3d9   :  { %v750_v34 = vmax.f32 %v716_v30, 0.0 }
 0x3da   :  { %v749_v35 = vmax.f32 %v711_v33, 0.0  ;;  %v1935_v36 = vpop.f32.mrb[28].mxu1  ;;  %2308 = vmatprep.subr.bf16.mxu0 %v2307_v32 }
 0x3db   :  { %766 = vst [vmem:[%s3028_s10 + $0x58] sm:$0xff] %v750_v34  ;;  %v726_v37 = vadd.f32 %v1935_v36, %v2837_v43  ;;  %v720_v38 = vpop.f32.mrb[29].mxu1  ;;  %2310 = vmatpush3.bf16.msra.mxu0 %v2307_v32 }
 0x3dc   :  { %765 = vst [vmem:[%s3028_s10 + $0x50] sm:$0xff] %v749_v35  ;;  %v2311_v39 = vpack.c.bf16 %v750_v34, %v749_v35  ;;  %v721_v40 = vadd.f32 %v2837_v43, %v720_v38 }
 0x3dd   :  { %v752_v42 = vmax.f32 %v726_v37, 0.0 }
 0x3de   :  { %v751_v44 = vmax.f32 %v721_v40, 0.0  ;;  %v1938_v46 = vpop.f32.mrb[30].mxu1  ;;  %2312 = vmatprep.subr.bf16.mxu0 %v2311_v39 }
 0x3df   :  { %768 = vst [vmem:[%s3028_s10 + $0x68] sm:$0xff] %v752_v42  ;;  %v736_v48 = vadd.f32 %v1938_v46, %v2837_v43  ;;  %v730_v49 = vpop.f32.mrb[31].mxu1  ;;  %2314 = vmatpush3.bf16.msra.mxu0 %v2311_v39 }
 0x3e0   :  { %767 = vst [vmem:[%s3028_s10 + $0x60] sm:$0xff] %v751_v44  ;;  %v2315_v51 = vpack.c.bf16 %v752_v42, %v751_v44  ;;  %v731_v0 = vadd.f32 %v2837_v43, %v730_v49  ;;  %v1110_v43 = vld [vmem:[#allocation4 + $0x50] sm:$0xff] }
 0x3e1   :  { %v754_v1 = vmax.f32 %v736_v48, 0.0  ;;  %v2375_v4 = vpack.c.bf16 %v1111_v3, %v1110_v43 }
 0x3e2   :  { %v753_v41 = vmax.f32 %v731_v0, 0.0  ;;  %2316 = vmatprep.subr.bf16.mxu0 %v2315_v51 }
 0x3e3   :  { %770 = vst [vmem:[%s3028_s10 + $0x78] sm:$0xff] %v754_v1  ;;  %2318 = vmatpush3.bf16.msra.mxu0 %v2315_v51 }
 0x3e4   :  { %769 = vst [vmem:[%s3028_s10 + $0x70] sm:$0xff] %v753_v41  ;;  %v2319_v2 = vpack.c.bf16 %v754_v1, %v753_v41 }
 0x3e6   :  { %2320 = vmatprep.subr.bf16.mxu0 %v2319_v2 }
 0x3e7   :  { %2322 = vmatpush3.bf16.msra.mxu0 %v2319_v2 }
 0x3ea   :  { %1972 = vmatmul.mubr.f32.vlgmr.msra.gmra.mrb[32].mxu0 %v2673_v45  ;;  %v1100_v45 = vld [vmem:[#allocation4] sm:$0xff] }
 0x3eb   :  { %1974 = vmatprep.mubr.f32.mxu0 %v2678_v47  ;;  %v1101_v47 = vld [vmem:[#allocation4 + $0x8] sm:$0xff] }
 0x3ee   :  { %1975 = vmatmul.mubr.f32.gmra.mrb[34].mxu0 %v2691_v50  ;;  %v1102_v50 = vld [vmem:[#allocation4 + $0x10] sm:$0xff] }
 0x3ef   :  { %1977 = vmatprep.mubr.f32.mxu0 %v2696_v52  ;;  %v2355_v52 = vpack.c.bf16 %v1101_v47, %v1100_v45 }
 0x3f1   :  { %2356 = vmatprep.subr.bf16.mxu0 %v2355_v52 }
 0x3f2   :  { %1978 = vmatmul.mubr.f32.gmra.mrb[36].mxu0 %v2703_v53  ;;  %v1103_v53 = vld [vmem:[#allocation4 + $0x18] sm:$0xff] }
 0x3f3   :  { %1980 = vmatprep.mubr.f32.mxu0 %v2708_v54  ;;  %v2359_v54 = vpack.c.bf16 %v1103_v53, %v1102_v50  ;;  %2358 = vmatpush3.bf16.msra.mxu0 %v2355_v52 }
 0x3f5   :  { %2360 = vmatprep.subr.bf16.mxu0 %v2359_v54 }
 0x3f6   :  { %1981 = vmatmul.mubr.f32.gmra.mrb[38].mxu0 %v2715_v55  ;;  %v1104_v55 = vld [vmem:[#allocation4 + $0x20] sm:$0xff] }
 0x3f7   :  { %1983 = vmatprep.mubr.f32.mxu0 %v2720_v56  ;;  %v1105_v56 = vld [vmem:[#allocation4 + $0x28] sm:$0xff]  ;;  %2362 = vmatpush3.bf16.msra.mxu0 %v2359_v54 }
 0x3fa   :  { %1984 = vmatmul.mubr.f32.gmra.mrb[40].mxu0 %v2727_v57  ;;  %v2363_v57 = vpack.c.bf16 %v1105_v56, %v1104_v55 }
 0x3fb   :  { %1986 = vmatprep.mubr.f32.mxu0 %v2732_v58  ;;  %v1106_v58 = vld [vmem:[#allocation4 + $0x30] sm:$0xff] }
 0x3fc   :  { %2364 = vmatprep.subr.bf16.mxu0 %v2363_v57 }
 0x3fd   :  { %2366 = vmatpush3.bf16.msra.mxu0 %v2363_v57 }
 0x3fe   :  { %1987 = vmatmul.mubr.f32.gmra.mrb[42].mxu0 %v2739_v59  ;;  %v1107_v59 = vld [vmem:[#allocation4 + $0x38] sm:$0xff] }
 0x3ff   :  { %1989 = vmatprep.mubr.f32.mxu0 %v2744_v60  ;;  %v2367_v60 = vpack.c.bf16 %v1107_v59, %v1106_v58 }
 0x401   :  { %2368 = vmatprep.subr.bf16.mxu0 %v2367_v60 }
 0x402   :  { %1990 = vmatmul.mubr.f32.gmra.mrb[44].mxu0 %v2751_v61  ;;  %v1108_v61 = vld [vmem:[#allocation4 + $0x40] sm:$0xff] }
 0x403   :  { %1992 = vmatprep.mubr.f32.mxu0 %v2756_v62  ;;  %v1109_v62 = vld [vmem:[#allocation4 + $0x48] sm:$0xff]  ;;  %2370 = vmatpush3.bf16.msra.mxu0 %v2367_v60 }
 0x406   :  { %1993 = vmatmul.mubr.f32.gmra.mrb[46].mxu0 %v2763_v63  ;;  %v2371_v63 = vpack.c.bf16 %v1109_v62, %v1108_v61 }
 0x408   :  { %2372 = vmatprep.subr.bf16.mxu0 %v2371_v63 }
 0x409   :  { %2374 = vmatpush3.bf16.msra.mxu0 %v2371_v63 }
 0x40a   :  { %2376 = vmatprep.subr.bf16.mxu0 %v2375_v4 }
 0x40d   :  { %2378 = vmatpush3.bf16.msra.mxu0 %v2375_v4 }
 0x40e   :  { %2380 = vmatprep.subr.bf16.mxu0 %v2379_v7 }
 0x411   :  { %2382 = vmatpush3.bf16.msra.mxu0 %v2379_v7 }
 0x412   :  { %2384 = vmatprep.subr.bf16.mxu0 %v2383_v27 }
 0x415   :  { %2386 = vmatpush3.bf16.msra.mxu0 %v2383_v27 }
 0x4bd   :  { %v1973_v8 = vpop.f32.mrb[32].mxu0 }
 0x4be   :  { %v853_v10 = vpop.f32.mrb[33].mxu0 }
 0x4bf   :  { %2027 = vmatprep.mubr.f32.mxu1 %v853_v10 }
 0x4c0   :  { %2028 = vmatmul.mubr.f32.vlgmr.msra.gmra.mrb[32].mxu1 %v1973_v8 }
 0x4c1   :  { %v1976_v11 = vpop.f32.mrb[34].mxu0 }
 0x4c2   :  { %v863_v12 = vpop.f32.mrb[35].mxu0 }
 0x4c3   :  { %2030 = vmatprep.mubr.f32.mxu1 %v863_v12 }
 0x4c4   :  { %2031 = vmatmul.mubr.f32.gmra.mrb[34].mxu1 %v1976_v11 }
 0x4c5   :  { %v1979_v13 = vpop.f32.mrb[36].mxu0 }
 0x4c6   :  { %v873_v14 = vpop.f32.mrb[37].mxu0 }
 0x4c7   :  { %2033 = vmatprep.mubr.f32.mxu1 %v873_v14 }
 0x4c8   :  { %2034 = vmatmul.mubr.f32.gmra.mrb[36].mxu1 %v1979_v13 }
 0x4c9   :  { %v1982_v15 = vpop.f32.mrb[38].mxu0 }
 0x4ca   :  { %v883_v16 = vpop.f32.mrb[39].mxu0 }
 0x4cb   :  { %2036 = vmatprep.mubr.f32.mxu1 %v883_v16 }
 0x4cc   :  { %2037 = vmatmul.mubr.f32.gmra.mrb[38].mxu1 %v1982_v15 }
 0x4cd   :  { %v1985_v17 = vpop.f32.mrb[40].mxu0 }
 0x4ce   :  { %v893_v18 = vpop.f32.mrb[41].mxu0 }
 0x4cf   :  { %2039 = vmatprep.mubr.f32.mxu1 %v893_v18 }
 0x4d0   :  { %2040 = vmatmul.mubr.f32.gmra.mrb[40].mxu1 %v1985_v17 }
 0x4d1   :  { %v1988_v19 = vpop.f32.mrb[42].mxu0 }
 0x4d2   :  { %v903_v20 = vpop.f32.mrb[43].mxu0 }
 0x4d3   :  { %2042 = vmatprep.mubr.f32.mxu1 %v903_v20 }
 0x4d4   :  { %2043 = vmatmul.mubr.f32.gmra.mrb[42].mxu1 %v1988_v19 }
 0x4d5   :  { %v1991_v21 = vpop.f32.mrb[44].mxu0 }
 0x4d6   :  { %v913_v22 = vpop.f32.mrb[45].mxu0 }
 0x4d7   :  { %2045 = vmatprep.mubr.f32.mxu1 %v913_v22 }
 0x4d8   :  { %2046 = vmatmul.mubr.f32.gmra.mrb[44].mxu1 %v1991_v21 }
 0x4d9   :  { %v1994_v23 = vpop.f32.mrb[46].mxu0 }
 0x4da   :  { %v923_v24 = vpop.f32.mrb[47].mxu0 }
 0x4db   :  { %2048 = vmatprep.mubr.f32.mxu1 %v923_v24 }
 0x4dc   :  { %2049 = vmatmul.mubr.f32.gmra.mrb[46].mxu1 %v1994_v23 }
 0x4dd   :  { %2139 = vmatprep.mubr.f32.mxu1 %v2595_v9 }
 0x593   :  { %v2029_v29 = vpop.f32.mrb[32].mxu1 }
 0x594   :  { %v1011_v30 = vadd.f32 %v2029_v29, %v1457_v28  ;;  %v1005_v31 = vpop.f32.mrb[33].mxu1 }
 0x595   :  { %v1006_v32 = vadd.f32 %v1457_v28, %v1005_v31 }
 0x596   :  { %v1085_v35 = vmax.f32 %v1011_v30, 0.0 }
 0x597   :  { %v1084_v33 = vmax.f32 %v1006_v32, 0.0  ;;  %v2032_v34 = vpop.f32.mrb[34].mxu1 }
 0x598   :  { %v1021_v36 = vadd.f32 %v2032_v34, %v1457_v28  ;;  %v1015_v37 = vpop.f32.mrb[35].mxu1 }
 0x599   :  { %v1016_v38 = vadd.f32 %v1457_v28, %v1015_v37  ;;  %2083 = vmatprep.mubr.f32.mxu0 %v1084_v33  ;;  %v2423_v37 = vld [vmem:[%s3019_s1 + $0x8] sm:$0xff] }
 0x59a   :  { %2084 = vmatmul.mubr.f32.vlgmr.msra.gmra.mrb[48].mxu0 %v1085_v35  ;;  %v1087_v40 = vmax.f32 %v1021_v36, 0.0 }
 0x59b   :  { %v1086_v9 = vmax.f32 %v1016_v38, 0.0  ;;  %v2035_v39 = vpop.f32.mrb[36].mxu1  ;;  %v2424_v38 = vld [vmem:[%s3019_s1 + $0x10] sm:$0xff] }
 0x59c   :  { %v1031_v42 = vadd.f32 %v2035_v39, %v1457_v28  ;;  %v1025_v44 = vpop.f32.mrb[37].mxu1  ;;  %v2426_v39 = vld [vmem:[%s3019_s1 + $0x20] sm:$0xff] }
 0x59d   :  { %v1026_v46 = vadd.f32 %v1457_v28, %v1025_v44  ;;  %2086 = vmatprep.mubr.f32.mxu0 %v1086_v9  ;;  %v2425_v9 = vld [vmem:[%s3019_s1 + $0x18] sm:$0xff] }
 0x59e   :  { %2087 = vmatmul.mubr.f32.gmra.mrb[50].mxu0 %v1087_v40  ;;  %v1089_v51 = vmax.f32 %v1031_v42, 0.0  ;;  %v2427_v40 = vld [vmem:[%s3019_s1 + $0x28] sm:$0xff]  ;;  %v2428_v42 = vld [vmem:[%s3019_s1 + $0x30] sm:$0xff]  ;;  %v2429_v44 = vld [vmem:[%s3019_s1 + $0x38] sm:$0xff] }
 0x59f   :  { %v1088_v48 = vmax.f32 %v1026_v46, 0.0  ;;  %v2038_v49 = vpop.f32.mrb[38].mxu1  ;;  %v2430_v46 = vld [vmem:[%s3019_s1 + $0x40] sm:$0xff] }
 0x5a0   :  { %v1041_v0 = vadd.f32 %v2038_v49, %v1457_v28  ;;  %v1035_v1 = vpop.f32.mrb[39].mxu1  ;;  %v2432_v49 = vld [vmem:[%s3019_s1 + $0x50] sm:$0xff] }
 0x5a1   :  { %v1036_v41 = vadd.f32 %v1457_v28, %v1035_v1  ;;  %2089 = vmatprep.mubr.f32.mxu0 %v1088_v48  ;;  %v2431_v48 = vld [vmem:[%s3019_s1 + $0x48] sm:$0xff] }
 0x5a2   :  { %2090 = vmatmul.mubr.f32.gmra.mrb[52].mxu0 %v1089_v51  ;;  %v1091_v47 = vmax.f32 %v1041_v0, 0.0  ;;  %v2433_v51 = vld [vmem:[%s3019_s1 + $0x58] sm:$0xff]  ;;  %v2434_v0 = vld [vmem:[%s3019_s1 + $0x60] sm:$0xff]  ;;  %v2435_v1 = vld [vmem:[%s3019_s1 + $0x68] sm:$0xff] }
 0x5a3   :  { %v1090_v2 = vmax.f32 %v1036_v41, 0.0  ;;  %v2041_v45 = vpop.f32.mrb[40].mxu1  ;;  %v2436_v41 = vld [vmem:[%s3019_s1 + $0x70] sm:$0xff] }
 0x5a4   :  { %v1051_v50 = vadd.f32 %v2041_v45, %v1457_v28  ;;  %v1045_v52 = vpop.f32.mrb[41].mxu1  ;;  %v1458_v45 = vld [vmem:[%s3027_s9] ss:$0 sm:$0xff] }
 0x5a5   :  { %v1046_v53 = vadd.f32 %v1457_v28, %v1045_v52  ;;  %2092 = vmatprep.mubr.f32.mxu0 %v1090_v2  ;;  %v2437_v2 = vld [vmem:[%s3019_s1 + $0x78] sm:$0xff] }
 0x5a6   :  { %2093 = vmatmul.mubr.f32.gmra.mrb[54].mxu0 %v1091_v47  ;;  %v1093_v56 = vmax.f32 %v1051_v50, 0.0 }
 0x5a7   :  { %v1092_v54 = vmax.f32 %v1046_v53, 0.0  ;;  %v2044_v55 = vpop.f32.mrb[42].mxu1 }
 0x5a8   :  { %v1061_v57 = vadd.f32 %v2044_v55, %v1457_v28  ;;  %v1055_v58 = vpop.f32.mrb[43].mxu1 }
 0x5a9   :  { %v1056_v59 = vadd.f32 %v1457_v28, %v1055_v58  ;;  %2095 = vmatprep.mubr.f32.mxu0 %v1092_v54 }
 0x5aa   :  { %2096 = vmatmul.mubr.f32.gmra.mrb[56].mxu0 %v1093_v56  ;;  %v1095_v62 = vmax.f32 %v1061_v57, 0.0 }
 0x5ab   :  { %v1094_v60 = vmax.f32 %v1056_v59, 0.0  ;;  %v2047_v61 = vpop.f32.mrb[44].mxu1 }
 0x5ac   :  { %v1071_v63 = vadd.f32 %v2047_v61, %v1457_v28  ;;  %v1065_v43 = vpop.f32.mrb[45].mxu1 }
 0x5ad   :  { %v1066_v3 = vadd.f32 %v1457_v28, %v1065_v43  ;;  %2098 = vmatprep.mubr.f32.mxu0 %v1094_v60 }
 0x5ae   :  { %2099 = vmatmul.mubr.f32.gmra.mrb[58].mxu0 %v1095_v62  ;;  %v1097_v6 = vmax.f32 %v1071_v63, 0.0 }
 0x5af   :  { %v1096_v4 = vmax.f32 %v1066_v3, 0.0  ;;  %v2050_v5 = vpop.f32.mrb[46].mxu1 }
 0x5b0   :  { %v1081_v7 = vadd.f32 %v2050_v5, %v1457_v28  ;;  %v1075_v8 = vpop.f32.mrb[47].mxu1 }
 0x5b1   :  { %v1076_v10 = vadd.f32 %v1457_v28, %v1075_v8  ;;  %2101 = vmatprep.mubr.f32.mxu0 %v1096_v4 }
 0x5b2   :  { %2102 = vmatmul.mubr.f32.gmra.mrb[60].mxu0 %v1097_v6  ;;  %v1099_v12 = vmax.f32 %v1081_v7, 0.0 }
 0x5b3   :  { %v1098_v11 = vmax.f32 %v1076_v10, 0.0 }
 0x5b5   :  { %2104 = vmatprep.mubr.f32.mxu0 %v1098_v11 }
 0x5b6   :  { %2105 = vmatmul.mubr.f32.gmra.mrb[62].mxu0 %v1099_v12 }
 0x66d   :  { %v2085_v13 = vpop.f32.mrb[48].mxu0 }
 0x66e   :  { %v1182_v14 = vpop.f32.mrb[49].mxu0 }
 0x66f   :  { %v2387_v15 = vpack.c.bf16 %v2085_v13, %v1182_v14 }
 0x671   :  { %v2088_v16 = vpop.f32.mrb[50].mxu0  ;;  %2388 = vmatprep.subr.bf16.mxu1 %v2387_v15 }
 0x672   :  { %v1192_v17 = vpop.f32.mrb[51].mxu0  ;;  %2390 = vmatpush3.bf16.msra.mxu1 %v2387_v15 }
 0x673   :  { %v2391_v18 = vpack.c.bf16 %v2088_v16, %v1192_v17 }
 0x675   :  { %v2091_v19 = vpop.f32.mrb[52].mxu0  ;;  %2392 = vmatprep.subr.bf16.mxu1 %v2391_v18 }
 0x676   :  { %v1202_v20 = vpop.f32.mrb[53].mxu0  ;;  %2394 = vmatpush3.bf16.msra.mxu1 %v2391_v18 }
 0x677   :  { %v2395_v21 = vpack.c.bf16 %v2091_v19, %v1202_v20 }
 0x679   :  { %v2094_v22 = vpop.f32.mrb[54].mxu0  ;;  %2396 = vmatprep.subr.bf16.mxu1 %v2395_v21 }
 0x67a   :  { %v1212_v23 = vpop.f32.mrb[55].mxu0  ;;  %2398 = vmatpush3.bf16.msra.mxu1 %v2395_v21 }
 0x67b   :  { %v2399_v24 = vpack.c.bf16 %v2094_v22, %v1212_v23 }
 0x67d   :  { %v2097_v25 = vpop.f32.mrb[56].mxu0  ;;  %2400 = vmatprep.subr.bf16.mxu1 %v2399_v24 }
 0x67e   :  { %v1222_v26 = vpop.f32.mrb[57].mxu0  ;;  %2402 = vmatpush3.bf16.msra.mxu1 %v2399_v24 }
 0x67f   :  { %v2403_v27 = vpack.c.bf16 %v2097_v25, %v1222_v26 }
 0x681   :  { %v2100_v28 = vpop.f32.mrb[58].mxu0  ;;  %2404 = vmatprep.subr.bf16.mxu1 %v2403_v27 }
 0x682   :  { %v1232_v29 = vpop.f32.mrb[59].mxu0  ;;  %2406 = vmatpush3.bf16.msra.mxu1 %v2403_v27 }
 0x683   :  { %v2407_v30 = vpack.c.bf16 %v2100_v28, %v1232_v29 }
 0x685   :  { %v2103_v31 = vpop.f32.mrb[60].mxu0  ;;  %2408 = vmatprep.subr.bf16.mxu1 %v2407_v30 }
 0x686   :  { %v1242_v32 = vpop.f32.mrb[61].mxu0  ;;  %2410 = vmatpush3.bf16.msra.mxu1 %v2407_v30 }
 0x687   :  { %v2411_v33 = vpack.c.bf16 %v2103_v31, %v1242_v32 }
 0x689   :  { %v2106_v34 = vpop.f32.mrb[62].mxu0  ;;  %2412 = vmatprep.subr.bf16.mxu1 %v2411_v33 }
 0x68a   :  { %v1252_v35 = vpop.f32.mrb[63].mxu0  ;;  %2414 = vmatpush3.bf16.msra.mxu1 %v2411_v33 }
 0x68b   :  { %v2415_v36 = vpack.c.bf16 %v2106_v34, %v1252_v35 }
 0x68d   :  { %2416 = vmatprep.subr.bf16.mxu1 %v2415_v36 }
 0x68e   :  { %2418 = vmatpush3.bf16.msra.mxu1 %v2415_v36 }
 0x691   :  { %2140 = vmatmul.mubr.f32.vlgmr.msra.gmra.mrb[48].mxu1 %v2423_v37 }
 0x692   :  { %2142 = vmatprep.mubr.f32.mxu1 %v2424_v38 }
 0x695   :  { %2143 = vmatmul.mubr.f32.gmra.mrb[50].mxu1 %v2425_v9 }
 0x696   :  { %2145 = vmatprep.mubr.f32.mxu1 %v2426_v39 }
 0x699   :  { %2146 = vmatmul.mubr.f32.gmra.mrb[52].mxu1 %v2427_v40 }
 0x69a   :  { %2148 = vmatprep.mubr.f32.mxu1 %v2428_v42 }
 0x69d   :  { %2149 = vmatmul.mubr.f32.gmra.mrb[54].mxu1 %v2429_v44 }
 0x69e   :  { %2151 = vmatprep.mubr.f32.mxu1 %v2430_v46 }
 0x6a1   :  { %2152 = vmatmul.mubr.f32.gmra.mrb[56].mxu1 %v2431_v48 }
 0x6a2   :  { %2154 = vmatprep.mubr.f32.mxu1 %v2432_v49 }
 0x6a5   :  { %2155 = vmatmul.mubr.f32.gmra.mrb[58].mxu1 %v2433_v51 }
 0x6a6   :  { %2157 = vmatprep.mubr.f32.mxu1 %v2434_v0 }
 0x6a9   :  { %2158 = vmatmul.mubr.f32.gmra.mrb[60].mxu1 %v2435_v1 }
 0x6aa   :  { %2160 = vmatprep.mubr.f32.mxu1 %v2436_v41 }
 0x6ad   :  { %2161 = vmatmul.mubr.f32.gmra.mrb[62].mxu1 %v2437_v2 }
 0x764   :  { %v2141_v47 = vpop.f32.mrb[48].mxu1 }
 0x765   :  { %v1340_v50 = vadd.f32 %v2141_v47, %v1458_v45  ;;  %v1334_v52 = vpop.f32.mrb[49].mxu1 }
 0x766   :  { %v1335_v53 = vadd.f32 %v1458_v45, %v1334_v52 }
 0x767   :  { %v1414_v54 = vmax.f32 %v1340_v50, 0.0 }
 0x768   :  { %v1413_v55 = vmax.f32 %v1335_v53, 0.0  ;;  %v2144_v56 = vpop.f32.mrb[50].mxu1 }
 0x769   :  { %1430 = vst [vmem:[%s3029_s11 + $0x8] sm:$0xff] %v1414_v54  ;;  %v1350_v57 = vadd.f32 %v2144_v56, %v1458_v45  ;;  %v1344_v58 = vpop.f32.mrb[51].mxu1 }
 0x76a   :  { %1429 = vst [vmem:[%s3029_s11] sm:$0xff] %v1413_v55  ;;  %v1345_v59 = vadd.f32 %v1458_v45, %v1344_v58 }
 0x76b   :  { %v1416_v60 = vmax.f32 %v1350_v57, 0.0 }
 0x76c   :  { %v1415_v61 = vmax.f32 %v1345_v59, 0.0  ;;  %v2147_v62 = vpop.f32.mrb[52].mxu1 }
 0x76d   :  { %1432 = vst [vmem:[%s3029_s11 + $0x18] sm:$0xff] %v1416_v60  ;;  %v1360_v63 = vadd.f32 %v2147_v62, %v1458_v45  ;;  %v1354_v43 = vpop.f32.mrb[53].mxu1 }
 0x76e   :  { %1431 = vst [vmem:[%s3029_s11 + $0x10] sm:$0xff] %v1415_v61  ;;  %v1355_v3 = vadd.f32 %v1458_v45, %v1354_v43 }
 0x76f   :  { %v1418_v4 = vmax.f32 %v1360_v63, 0.0 }
 0x770   :  { %v1417_v5 = vmax.f32 %v1355_v3, 0.0  ;;  %v2150_v6 = vpop.f32.mrb[54].mxu1 }
 0x771   :  { %1434 = vst [vmem:[%s3029_s11 + $0x28] sm:$0xff] %v1418_v4  ;;  %v1370_v7 = vadd.f32 %v2150_v6, %v1458_v45  ;;  %v1364_v8 = vpop.f32.mrb[55].mxu1 }
 0x772   :  { %1433 = vst [vmem:[%s3029_s11 + $0x20] sm:$0xff] %v1417_v5  ;;  %v1365_v10 = vadd.f32 %v1458_v45, %v1364_v8 }
 0x773   :  { %v1420_v11 = vmax.f32 %v1370_v7, 0.0 }
 0x774   :  { %v1419_v12 = vmax.f32 %v1365_v10, 0.0  ;;  %v2153_v13 = vpop.f32.mrb[56].mxu1 }
 0x775   :  { %1436 = vst [vmem:[%s3029_s11 + $0x38] sm:$0xff] %v1420_v11  ;;  %v1380_v14 = vadd.f32 %v2153_v13, %v1458_v45  ;;  %v1374_v15 = vpop.f32.mrb[57].mxu1 }
 0x776   :  { %1435 = vst [vmem:[%s3029_s11 + $0x30] sm:$0xff] %v1419_v12  ;;  %v1375_v16 = vadd.f32 %v1458_v45, %v1374_v15 }
 0x777   :  { %v1422_v17 = vmax.f32 %v1380_v14, 0.0 }
 0x778   :  { %v1421_v18 = vmax.f32 %v1375_v16, 0.0  ;;  %v2156_v19 = vpop.f32.mrb[58].mxu1 }
 0x779   :  { %1438 = vst [vmem:[%s3029_s11 + $0x48] sm:$0xff] %v1422_v17  ;;  %v1390_v20 = vadd.f32 %v2156_v19, %v1458_v45  ;;  %v1384_v21 = vpop.f32.mrb[59].mxu1 }
 0x77a   :  { %1437 = vst [vmem:[%s3029_s11 + $0x40] sm:$0xff] %v1421_v18  ;;  %v1385_v22 = vadd.f32 %v1458_v45, %v1384_v21 }
 0x77b   :  { %v1424_v23 = vmax.f32 %v1390_v20, 0.0 }
 0x77c   :  { %v1423_v24 = vmax.f32 %v1385_v22, 0.0  ;;  %v2159_v25 = vpop.f32.mrb[60].mxu1 }
 0x77d   :  { %1440 = vst [vmem:[%s3029_s11 + $0x58] sm:$0xff] %v1424_v23  ;;  %v1400_v26 = vadd.f32 %v2159_v25, %v1458_v45  ;;  %v1394_v27 = vpop.f32.mrb[61].mxu1 }
 0x77e   :  { %1439 = vst [vmem:[%s3029_s11 + $0x50] sm:$0xff] %v1423_v24  ;;  %v1395_v28 = vadd.f32 %v1458_v45, %v1394_v27 }
 0x77f   :  { %v1426_v29 = vmax.f32 %v1400_v26, 0.0 }
 0x780   :  { %v1425_v30 = vmax.f32 %v1395_v28, 0.0  ;;  %v2162_v31 = vpop.f32.mrb[62].mxu1 }
 0x781   :  { %1442 = vst [vmem:[%s3029_s11 + $0x68] sm:$0xff] %v1426_v29  ;;  %v1410_v32 = vadd.f32 %v2162_v31, %v1458_v45  ;;  %v1404_v33 = vpop.f32.mrb[63].mxu1 }
 0x782   :  { %1441 = vst [vmem:[%s3029_s11 + $0x60] sm:$0xff] %v1425_v30  ;;  %v1405_v34 = vadd.f32 %v1458_v45, %v1404_v33 }
 0x783   :  { %v1428_v35 = vmax.f32 %v1410_v32, 0.0 }
 0x784   :  { %v1427_v36 = vmax.f32 %v1405_v34, 0.0 }
 0x785   :  { %1444 = vst [vmem:[%s3029_s11 + $0x78] sm:$0xff] %v1428_v35 }
 0x786   :  { %1443 = vst [vmem:[%s3029_s11 + $0x70] sm:$0xff] %v1427_v36 }
 0x787   :  { %1453 = vsyncpa [#allocation3], 1 }
 0x788   :  { %1454 = vsyncpa [#allocation5], 1 }

</bundles_post_ra>
